<compile_context>
chip_gen: v5e
topology: v5e:2x2
jax: 0.10.0
libtpu: 0.0.40
codegen_flags: <defaults>
</compile_context>

<pallas_src>
import jax
import jax.numpy as jnp
from jax.experimental import pallas as pl
from jax.experimental.pallas import tpu as pltpu


_LANE = 128
_NEG_INF = jnp.float32(-1e30)  # padded-logit-lane bias: exp(-1e30 - m) == 0 in f32


def _round_up(n, m):
    return ((n + m - 1) // m) * m


def hebbnet_kernel(x_ref, w1_ref, w2_ref, b2_ref, z_ref, pred_ref):
    # x: (TB, D) bf16 | w1: (D, Hp) bf16 | w2: (Hp, Op) bf16 | b2: (1, Op) f32
    x = x_ref[...]

    # Hebbian layer: Linear(no bias) + ReLU.  bf16 MXU operands, f32 accumulate.
    z = jnp.dot(x, w1_ref[...], preferred_element_type=jnp.float32)
    z = jnp.maximum(z, 0.0)                       # VPU, f32
    z_ref[...] = z.astype(z_ref.dtype)            # lane-dense (TB, Hp) store

    # Classification layer: Linear(bias) + numerically-stable log-softmax.
    # Padded lanes carry bias = -1e30 -> exp underflows to 0, max is unaffected.
    logits = jnp.dot(z.astype(jnp.bfloat16), w2_ref[...],
                     preferred_element_type=jnp.float32)
    logits = logits + b2_ref[...]                 # broadcast (1, Op) over batch
    m = jnp.max(logits, axis=1, keepdims=True)
    lse = m + jnp.log(jnp.sum(jnp.exp(logits - m), axis=1, keepdims=True))
    pred_ref[...] = (logits - lse).astype(pred_ref.dtype)


def prepare_params(w1, w2, b2):
    """One-time parameter prep (out of the per-call hot path): transpose to
    row-major matmul layout, pad feature dims to 128 lanes, cast matmul
    operands to bf16, mask padded logit lanes via the bias."""
    Hh, D = w1.shape
    O = w2.shape[0]
    Hp = _round_up(Hh, _LANE)
    Op = _round_up(O, _LANE)

    w1_t = jnp.zeros((D, Hp), jnp.bfloat16).at[:, :Hh].set(w1.T.astype(jnp.bfloat16))
    w2_t = jnp.zeros((Hp, Op), jnp.bfloat16).at[:Hh, :O].set(w2.T.astype(jnp.bfloat16))
    b2_row = jnp.full((1, Op), _NEG_INF, jnp.float32).at[:, :O].set(
        b2.reshape(1, O).astype(jnp.float32))
    return {"w1_t": w1_t, "w2_t": w2_t, "b2": b2_row,
            "D": int(D), "Hh": int(Hh), "O": int(O), "Hp": int(Hp), "Op": int(Op)}


def _choose_batch_tile(B, tile_b):
    """Batch tile: single block for small B; two roughly-equal tiles in the
    mid range so v7x's two TensorCores both get work; fixed large tiles
    (>= ~85% of HBM roofline per measurements) once B is big."""
    if B <= 256:
        return B                                   # one full block
    if B <= 2 * tile_b:
        return _round_up(pl.cdiv(B, 2), 8)         # >= 2 grid steps (megacore)
    return tile_b


def hebbnet_forward(x, params, *, tile_b=2048):
    """x: (B, C, H, W) NCHW (or already (B, D)); params from prepare_params()."""
    w1_t, w2_t, b2 = params["w1_t"], params["w2_t"], params["b2"]
    D, Hh, O = params["D"], params["Hh"], params["O"]
    Hp, Op = params["Hp"], params["Op"]

    B = x.shape[0]
    x_flat = x.reshape(B, -1).astype(jnp.float32)   # nn.Flatten (returned as-is)
    assert x_flat.shape[1] == D, "input feature size mismatch with prepared weights"

    # Kernel input is bf16: single cast in the wrapper, halves the x HBM read.
    x_in = x_flat.astype(jnp.bfloat16)

    tb = _choose_batch_tile(B, tile_b)
    nblocks = pl.cdiv(B, tb)                        # partial edge block is masked
    grid = (nblocks,)
    Bp = nblocks * tb                               # logical rows processed

    cost = pl.CostEstimate(
        flops=2 * Bp * D * Hp + 2 * Bp * Hp * Op,
        transcendentals=Bp * (Op + 1),
        bytes_accessed=(B * D * 2 + w1_t.size * 2 + w2_t.size * 2
                        + b2.size * 4 + B * Hp * 4 + B * Op * 4),
    )

    # Tight VMEM request: resident weights (counted double-buffered to be safe),
    # double-buffered batch tiles, f32 intermediates, plus margin.  No 32 MiB
    # floor; capped at 56 MiB so v7x (64 MiB physical) keeps compiler headroom.
    vmem_need = (
        2 * (w1_t.size * 2 + w2_t.size * 2 + b2.size * 4)
        + 2 * tb * D * 2                     # bf16 x tile, double-buffered
        + 2 * tb * (Hp + Op) * 4             # z / pred output tiles, double-buffered
        + 3 * tb * (Hp + Op) * 4             # f32 in-kernel intermediates
        + (4 << 20)                          # compiler scratch margin
    )
    vmem_limit = int(min(max(vmem_need, 8 << 20), 56 << 20))

    z_p, pred_p = pl.pallas_call(
        hebbnet_kernel,
        grid=grid,
        in_specs=[
            pl.BlockSpec((tb, D), lambda i: (i, 0)),    # batch-tiled activations (bf16)
            pl.BlockSpec((D, Hp), lambda i: (0, 0)),    # weights resident across grid
            pl.BlockSpec((Hp, Op), lambda i: (0, 0)),
            pl.BlockSpec((1, Op), lambda i: (0, 0)),
        ],
        out_specs=(
            pl.BlockSpec((tb, Hp), lambda i: (i, 0)),   # lane-dense (128-mult) stores
            pl.BlockSpec((tb, Op), lambda i: (i, 0)),
        ),
        out_shape=(
            jax.ShapeDtypeStruct((B, Hp), jnp.float32),
            jax.ShapeDtypeStruct((B, Op), jnp.float32),
        ),
        compiler_params=pltpu.CompilerParams(
            dimension_semantics=("parallel",),          # shards batch across v7x's 2 TCs
            vmem_limit_bytes=vmem_limit,
        ),
        cost_estimate=cost,
    )(x_in, w1_t, w2_t, b2)

    # Strip lane padding back to the PyTorch output shapes.
    z = z_p[:, :Hh]
    pred = pred_p[:, :O]
    return x_flat, z, pred


def init_params(key, input_size, hidden_size, output_size):
    """Deterministic nn.Linear-style init: U(-1/sqrt(fan_in), 1/sqrt(fan_in))."""
    k1, k2, k3 = jax.random.split(key, 3)
    bound1 = 1.0 / jnp.sqrt(input_size)
    bound2 = 1.0 / jnp.sqrt(hidden_size)
    w1 = jax.random.uniform(k1, (hidden_size, input_size), jnp.float32, -bound1, bound1)
    w2 = jax.random.uniform(k2, (output_size, hidden_size), jnp.float32, -bound2, bound2)
    b2 = jax.random.uniform(k3, (output_size,), jnp.float32, -bound2, bound2)
    return w1, w2, b2


if __name__ == "__main__":
    key = jax.random.PRNGKey(0)
    kx, kp = jax.random.split(key)

    # Small shapes: batch=2, channels=4, spatial=16x16 -> input_layer_size=1024
    B, C, H, W = 2, 4, 16, 16
    input_layer_size = C * H * W
    hidden_layer_size = 32
    output_layer_size = 10

    x = jax.random.normal(kx, (B, C, H, W), jnp.float32)
    w1, w2, b2 = init_params(kp, input_layer_size, hidden_layer_size, output_layer_size)

    # One-time prep (transpose / pad / bf16 cast) — out of the per-call hot path.
    params = prepare_params(w1, w2, b2)

    x_flat, z, pred = hebbnet_forward(x, params)
    jax.block_until_ready((x_flat, z, pred))

    # Cross-check against plain-JAX f32 reference.  Matmul operands are bf16
    # inside the kernel, so tolerances are loosened accordingly.
    x_ref = x.reshape(B, -1)
    z_ref = jnp.maximum(x_ref @ w1.T, 0.0)
    logits_ref = z_ref @ w2.T + b2
    pred_ref = jax.nn.log_softmax(logits_ref, axis=1)

    assert x_flat.shape == (B, input_layer_size)
    assert z.shape == (B, hidden_layer_size)
    assert pred.shape == (B, output_layer_size)
    assert jnp.allclose(x_flat, x_ref)
    assert jnp.allclose(z, z_ref, atol=3e-2, rtol=3e-2)
    assert jnp.allclose(pred, pred_ref, atol=3e-2, rtol=3e-2)

    print("KERNEL_OK")
</pallas_src>

<mosaic_0001>
module attributes {stable_mosaic.version = 11 : i64} {
  func.func @hebbnet_kernel(%arg0: i32, %arg1: memref<2x1024xbf16, #tpu.memory_space<vmem>>, %arg2: memref<1024x128xbf16, #tpu.memory_space<vmem>>, %arg3: memref<128x128xbf16, #tpu.memory_space<vmem>>, %arg4: memref<1x128xf32, #tpu.memory_space<vmem>>, %arg5: memref<2x128xf32, #tpu.memory_space<vmem>>, %arg6: memref<2x128xf32, #tpu.memory_space<vmem>>) attributes {dimension_semantics = [#tpu.dimension_semantics<parallel>], iteration_bounds = array<i64: 1>, scalar_prefetch = 0 : i64, scratch_operands = 0 : i64, tpu.core_type = #tpu.core_type<tc>, window_params = [{transform_indices = @transform_0, window_bounds = array<i64: 2, 1024>}, {pipeline_mode = #tpu.pipeline_mode<synchronous>, transform_indices = @transform_1, window_bounds = array<i64: 1024, 128>}, {pipeline_mode = #tpu.pipeline_mode<synchronous>, transform_indices = @transform_2, window_bounds = array<i64: 128, 128>}, {pipeline_mode = #tpu.pipeline_mode<synchronous>, transform_indices = @transform_3, window_bounds = array<i64: 1, 128>}, {transform_indices = @transform_4, window_bounds = array<i64: 2, 128>}, {transform_indices = @transform_5, window_bounds = array<i64: 2, 128>}]} {
    %c0 = arith.constant 0 : index
    %c0_0 = arith.constant 0 : index
    %0 = vector.load %arg1[%c0, %c0_0] : memref<2x1024xbf16, #tpu.memory_space<vmem>>, vector<2x1024xbf16>
    %c0_1 = arith.constant 0 : index
    %c0_2 = arith.constant 0 : index
    %1 = vector.load %arg2[%c0_1, %c0_2] : memref<1024x128xbf16, #tpu.memory_space<vmem>>, vector<1024x128xbf16>
    %cst = arith.constant dense<0.000000e+00> : vector<2x128xf32>
    %2 = tpu.matmul %0, %1, %cst {dimension_numbers = #tpu.dot_dimension_numbers<[1], [0], [0], [1], [0, 0, 1, 1], [], []>} : vector<2x1024xbf16>, vector<1024x128xbf16>, vector<2x128xf32> -> vector<2x128xf32>
    %cst_3 = arith.constant 0.000000e+00 : f32
    %3 = vector.broadcast %cst_3 : f32 to vector<2x128xf32>
    %4 = arith.maximumf %2, %3 : vector<2x128xf32>
    %c0_4 = arith.constant 0 : index
    %c0_5 = arith.constant 0 : index
    %5 = vector.load %arg5[%c0_4, %c0_5] : memref<2x128xf32, #tpu.memory_space<vmem>>, vector<2x128xf32>
    tpu.vector_store %arg5[%c0_4, %c0_5], %4 {strides = array<i32>} : memref<2x128xf32, #tpu.memory_space<vmem>>, vector<2x128xf32>,
    %6 = arith.truncf %4 : vector<2x128xf32> to vector<2x128xbf16>
    %c0_6 = arith.constant 0 : index
    %c0_7 = arith.constant 0 : index
    %7 = vector.load %arg3[%c0_6, %c0_7] : memref<128x128xbf16, #tpu.memory_space<vmem>>, vector<128x128xbf16>
    %cst_8 = arith.constant dense<0.000000e+00> : vector<2x128xf32>
    %8 = tpu.matmul %6, %7, %cst_8 {dimension_numbers = #tpu.dot_dimension_numbers<[1], [0], [0], [1], [0, 0, 1, 1], [], []>} : vector<2x128xbf16>, vector<128x128xbf16>, vector<2x128xf32> -> vector<2x128xf32>
    %c0_9 = arith.constant 0 : index
    %c0_10 = arith.constant 0 : index
    %9 = vector.load %arg4[%c0_9, %c0_10] : memref<1x128xf32, #tpu.memory_space<vmem>>, vector<1x128xf32>
    %10 = vector.broadcast %9 : vector<1x128xf32> to vector<2x128xf32>
    %11 = arith.addf %8, %10 : vector<2x128xf32>
    %cst_11 = arith.constant dense<0xFF800000> : vector<2xf32>
    %12 = vector.multi_reduction <maximumf>, %11, %cst_11 [1] : vector<2x128xf32> to vector<2xf32>
    %13 = vector.shape_cast %12 : vector<2xf32> to vector<2x1xf32>
    %14 = vector.broadcast %13 : vector<2x1xf32> to vector<2x128xf32>
    %15 = arith.subf %11, %14 : vector<2x128xf32>
    %16 = math.exp %15 : vector<2x128xf32>
    %cst_12 = arith.constant dense<0.000000e+00> : vector<2xf32>
    %17 = vector.multi_reduction <add>, %16, %cst_12 [1] : vector<2x128xf32> to vector<2xf32>
    %18 = vector.shape_cast %17 : vector<2xf32> to vector<2x1xf32>
    %19 = math.log %18 : vector<2x1xf32>
    %20 = arith.addf %13, %19 : vector<2x1xf32>
    %21 = vector.broadcast %20 : vector<2x1xf32> to vector<2x128xf32>
    %22 = arith.subf %11, %21 : vector<2x128xf32>
    %c0_13 = arith.constant 0 : index
    %c0_14 = arith.constant 0 : index
    %23 = vector.load %arg6[%c0_13, %c0_14] : memref<2x128xf32, #tpu.memory_space<vmem>>, vector<2x128xf32>
    tpu.vector_store %arg6[%c0_13, %c0_14], %22 {strides = array<i32>} : memref<2x128xf32, #tpu.memory_space<vmem>>, vector<2x128xf32>,
    return
  }
  func.func @transform_0(%arg0: i32) -> (i32, i32) {
    %c0_i32 = arith.constant 0 : i32
    %c0_i32_0 = arith.constant 0 : i32
    return %arg0, %c0_i32 : i32, i32
  }
  func.func @transform_1(%arg0: i32) -> (i32, i32) {
    %c0_i32 = arith.constant 0 : i32
    %c0_i32_0 = arith.constant 0 : i32
    %c0_i32_1 = arith.constant 0 : i32
    return %c0_i32, %c0_i32_0 : i32, i32
  }
  func.func @transform_2(%arg0: i32) -> (i32, i32) {
    %c0_i32 = arith.constant 0 : i32
    %c0_i32_0 = arith.constant 0 : i32
    %c0_i32_1 = arith.constant 0 : i32
    return %c0_i32, %c0_i32_0 : i32, i32
  }
  func.func @transform_3(%arg0: i32) -> (i32, i32) {
    %c0_i32 = arith.constant 0 : i32
    %c0_i32_0 = arith.constant 0 : i32
    %c0_i32_1 = arith.constant 0 : i32
    return %c0_i32, %c0_i32_0 : i32, i32
  }
  func.func @transform_4(%arg0: i32) -> (i32, i32) {
    %c0_i32 = arith.constant 0 : i32
    %c0_i32_0 = arith.constant 0 : i32
    return %arg0, %c0_i32 : i32, i32
  }
  func.func @transform_5(%arg0: i32) -> (i32, i32) {
    %c0_i32 = arith.constant 0 : i32
    %c0_i32_0 = arith.constant 0 : i32
    return %arg0, %c0_i32 : i32, i32
  }
}

</mosaic_0001>

<bundles_post_ra>
// kernel: tpu_custom_call.1
= control target key start
LH: loop header
LB: loop body
LE: loop exit
PB: predicated region body
PF: predicated region fallthrough
CT: control target
= control target key end

     0   :  { %11 = vsyncpa [#allocation3], 0  ;;  %s1389_s0 = inlined_call_operand.hbm [shape: bf16[2,1024], index: 0, kind: input, shape index: {}]   ;;  %s1390_s1 = inlined_call_operand.hbm [shape: bf16[1024,128], index: 1, kind: input, shape index: {}]   ;;  %s1391_s2 = inlined_call_operand.hbm [shape: bf16[128,128], index: 2, kind: input, shape index: {}]   ;;  %s1392_s3 = inlined_call_operand.vmem [shape: f32[1,128], index: 3, kind: input, shape index: {}]   ;;  %s1393_s4 = inlined_call_operand.hbm [shape: f32[2,128], index: 4, kind: output, shape index: {0}]   ;;  %s1394_s5 = inlined_call_operand.hbm [shape: f32[2,128], index: 5, kind: output, shape index: {1}]  }
   0x1   :  { %12 = vsyncpa [#allocation6], 0 }
   0x2   :  { %13 = vsyncpa [#allocation4], 0  ;;  %s30_s20 = sshll.u32 %s1390_s1, 4  ;;  %s31_s20 = int_to_ptr.hbm [resolvable:$true] %s30_s20 }
   0x3   :  { %14 = vsyncpa [#allocation10], 0  ;;  %s1334_s21 = smov [#allocation5]   ;;  %s20_s25 = sshll.u32 %s1389_s0, 4  ;;  %s21_s25 = int_to_ptr.hbm [resolvable:$true] %s20_s25 }
   0x4   :  { %s32_s22 = sshll.u32 %s1334_s21, 4  ;;  %s1335_s26 = smov 64   ;;  %s33_s22 = int_to_ptr.vmem [resolvable:$true] %s32_s22 }
   0x5   :  { %s1336_s27 = smov 4   ;;  %s1337_s28 = smov [#allocation2]  }
   0x6   :  { %38 = dma.hbm_to_vmem [thread:$0]  %s31_s20, 8192, %s33_s22, [#allocation6], %s1335_s26, %s1335_s26, %s1336_s27  }
   0x7   :  { %s22_s29 = sshll.u32 %s1337_s28, 4  ;;  %s43_s7 = sshll.u32 %s1391_s2, 4  ;;  %s23_s29 = int_to_ptr.vmem [resolvable:$true] %s22_s29  ;;  %s44_s7 = int_to_ptr.hbm [resolvable:$true] %s43_s7 }
   0x8   :  { %25 = dma.hbm_to_vmem [thread:$0]  %s21_s25, 128, %s23_s29, [#allocation3]  }
   0x9   :  { %s1338_s1 = smov [#allocation7]  }
   0xa   :  { %s45_s8 = sshll.u32 %s1338_s1, 4  ;;  %s46_s8 = int_to_ptr.vmem [resolvable:$true] %s45_s8 }
   0xb   :  { %51 = dma.hbm_to_vmem [thread:$0]  %s44_s7, 1024, %s46_s8, [#allocation6], %s1335_s26, %s1335_s26, %s1336_s27  }
   0xc   :  { %1326 = dma.done.wait [#allocation3], 128  }
   0xd   :  { %1327 = vsyncadd [#allocation3], 4294967168 }
   0xe   :  { %1328 = dma.done.wait [#allocation6], 9216  }
   0xf   :  { %1329 = vsyncadd [#allocation6], 4294958080  ;;  %v1129_v0 = vld [vmem:[#allocation5 + $0x38] sm:$0xff]  ;;  %v1128_v4 = vld [vmem:[#allocation5 + $0x30] sm:$0xff]  ;;  %vm785_vm0 = vcmask 1041408   ;;  %s807_s11 = sshll.u32 %s1393_s4, 4  ;;  %s808_s11 = int_to_ptr.hbm [resolvable:$true] %s807_s11 }
  0x10   :  { %v1137_v1 = vld [vmem:[#allocation5 + $0x78] sm:$0xff]  ;;  %597 = vmatpush.bf16.msra.mxu0 %v1129_v0  ;;  %v1136_v5 = vld [vmem:[#allocation5 + $0x70] sm:$0xff]  ;;  %v1127_v8 = vld [vmem:[#allocation5 + $0x28] sm:$0xff]  ;;  %s1339_s12 = smov [#allocation8]   ;;  %s818_s17 = sshll.u32 %s1394_s5, 4  ;;  %s819_s17 = int_to_ptr.hbm [resolvable:$true] %s818_s17 }
  0x11   :  { %v1145_v2 = vld [vmem:[#allocation5 + $0xb8] sm:$0xff]  ;;  %610 = vmatpush.bf16.msra.mxu1 %v1137_v1  ;;  %v1144_v6 = vld [vmem:[#allocation5 + $0xb0] sm:$0xff]  ;;  %v1135_v9 = vld [vmem:[#allocation5 + $0x68] sm:$0xff]  ;;  %s805_s13 = sshll.u32 %s1339_s12, 4  ;;  %s806_s13 = int_to_ptr.vmem [resolvable:$true] %s805_s13 }
  0x12   :  { %v1153_v3 = vld [vmem:[#allocation5 + $0xf8] sm:$0xff]  ;;  %623 = vmatpush.bf16.msra.mxu2 %v1145_v2  ;;  %v1152_v7 = vld [vmem:[#allocation5 + $0xf0] sm:$0xff]  ;;  %v1143_v10 = vld [vmem:[#allocation5 + $0xa8] sm:$0xff] }
  0x13   :  { %636 = vmatpush.bf16.msra.mxu3 %v1153_v3  ;;  %v1151_v11 = vld [vmem:[#allocation5 + $0xe8] sm:$0xff]  ;;  %v1126_v12 = vld [vmem:[#allocation5 + $0x20] sm:$0xff]  ;;  %v66_v16 = vld [vmem:[#allocation2] sm:$0xff] }
  0x14   :  { %598 = vmatpush.bf16.msra.mxu0 %v1128_v4  ;;  %v1134_v13 = vld [vmem:[#allocation5 + $0x60] sm:$0xff]  ;;  %v1125_v17 = vld [vmem:[#allocation5 + $0x18] sm:$0xff]  ;;  %196 = vst [vmem:[#allocation1] ss:$9 sm:$0xff] %v66_v16  ;;  %v1124_v21 = vld [vmem:[#allocation5 + $0x10] sm:$0xff] }
  0x15   :  { %611 = vmatpush.bf16.msra.mxu1 %v1136_v5  ;;  %v1142_v14 = vld [vmem:[#allocation5 + $0xa0] sm:$0xff]  ;;  %v1133_v18 = vld [vmem:[#allocation5 + $0x58] sm:$0xff]  ;;  %v1132_v22 = vld [vmem:[#allocation5 + $0x50] sm:$0xff] }
  0x16   :  { %624 = vmatpush.bf16.msra.mxu2 %v1144_v6  ;;  %v1150_v15 = vld [vmem:[#allocation5 + $0xe0] sm:$0xff]  ;;  %v1141_v19 = vld [vmem:[#allocation5 + $0x98] sm:$0xff]  ;;  %v1140_v23 = vld [vmem:[#allocation5 + $0x90] sm:$0xff] }
  0x17   :  { %637 = vmatpush.bf16.msra.mxu3 %v1152_v7  ;;  %v1149_v20 = vld [vmem:[#allocation5 + $0xd8] sm:$0xff]  ;;  %v1148_v24 = vld [vmem:[#allocation5 + $0xd0] sm:$0xff]  ;;  %v1123_v25 = vld [vmem:[#allocation5 + $0x8] sm:$0xff] }
  0x18   :  { %599 = vmatpush.bf16.msra.mxu0 %v1127_v8  ;;  %v1131_v26 = vld [vmem:[#allocation5 + $0x48] sm:$0xff]  ;;  %v1122_v29 = vld [vmem:[#allocation5] sm:$0xff]  ;;  %v1161_v33 = vld [vmem:[#allocation5 + $0x138] sm:$0xff] }
  0x19   :  { %612 = vmatpush.bf16.msra.mxu1 %v1135_v9  ;;  %v1139_v27 = vld [vmem:[#allocation5 + $0x88] sm:$0xff]  ;;  %v1130_v30 = vld [vmem:[#allocation5 + $0x40] sm:$0xff]  ;;  %v1169_v34 = vld [vmem:[#allocation5 + $0x178] sm:$0xff] }
  0x1a   :  { %625 = vmatpush.bf16.msra.mxu2 %v1143_v10  ;;  %v1147_v28 = vld [vmem:[#allocation5 + $0xc8] sm:$0xff]  ;;  %v1138_v31 = vld [vmem:[#allocation5 + $0x80] sm:$0xff]  ;;  %v1177_v35 = vld [vmem:[#allocation5 + $0x1b8] sm:$0xff] }
  0x1b   :  { %638 = vmatpush.bf16.msra.mxu3 %v1151_v11  ;;  %v1146_v32 = vld [vmem:[#allocation5 + $0xc0] sm:$0xff]  ;;  %v1185_v36 = vld [vmem:[#allocation5 + $0x1f8] sm:$0xff]  ;;  %v1160_v37 = vld [vmem:[#allocation5 + $0x130] sm:$0xff] }
  0x1c   :  { %600 = vmatpush.bf16.msra.mxu0 %v1126_v12  ;;  %v199_v38 = vld [vmem:[#allocation1 + $0x12] sm:$0xff]  ;;  %v197_v39 = vld [vmem:[#allocation1] sm:$0xff]  ;;  %v198_v42 = vld [vmem:[#allocation1 + $0x9] sm:$0xff] }
  0x1d   :  { %613 = vmatpush.bf16.msra.mxu1 %v1134_v13  ;;  %v1168_v40 = vld [vmem:[#allocation5 + $0x170] sm:$0xff]  ;;  %v1159_v45 = vld [vmem:[#allocation5 + $0x128] sm:$0xff]  ;;  %v1158_v49 = vld [vmem:[#allocation5 + $0x120] sm:$0xff] }
  0x1e   :  { %626 = vmatpush.bf16.msra.mxu2 %v1142_v14  ;;  %v200_v41 = vld [vmem:[#allocation1 + $0x1b] sm:$0xff]  ;;  %v1166_v50 = vld [vmem:[#allocation5 + $0x160] sm:$0xff]  ;;  %v1157_v53 = vld [vmem:[#allocation5 + $0x118] sm:$0xff] }
  0x1f   :  { %639 = vmatpush.bf16.msra.mxu3 %v1150_v15  ;;  %v1176_v43 = vld [vmem:[#allocation5 + $0x1b0] sm:$0xff]  ;;  %v1167_v46 = vld [vmem:[#allocation5 + $0x168] sm:$0xff]  ;;  %v1174_v51 = vld [vmem:[#allocation5 + $0x1a0] sm:$0xff] }
  0x20   :  { %601 = vmatpush.bf16.msra.mxu0 %v1125_v17  ;;  %v1184_v44 = vld [vmem:[#allocation5 + $0x1f0] sm:$0xff]  ;;  %v1175_v47 = vld [vmem:[#allocation5 + $0x1a8] sm:$0xff]  ;;  %v1182_v52 = vld [vmem:[#allocation5 + $0x1e0] sm:$0xff] }
  0x21   :  { %614 = vmatpush.bf16.msra.mxu1 %v1133_v18  ;;  %v1183_v48 = vld [vmem:[#allocation5 + $0x1e8] sm:$0xff]  ;;  %v1165_v54 = vld [vmem:[#allocation5 + $0x158] sm:$0xff]  ;;  %v1156_v57 = vld [vmem:[#allocation5 + $0x110] sm:$0xff] }
  0x22   :  { %627 = vmatpush.bf16.msra.mxu2 %v1141_v19  ;;  %v1173_v55 = vld [vmem:[#allocation5 + $0x198] sm:$0xff]  ;;  %v1164_v58 = vld [vmem:[#allocation5 + $0x150] sm:$0xff]  ;;  %v1155_v61 = vld [vmem:[#allocation5 + $0x108] sm:$0xff] }
  0x23   :  { %640 = vmatpush.bf16.msra.mxu3 %v1149_v20  ;;  %v1181_v56 = vld [vmem:[#allocation5 + $0x1d8] sm:$0xff]  ;;  %v1172_v59 = vld [vmem:[#allocation5 + $0x190] sm:$0xff]  ;;  %v1163_v62 = vld [vmem:[#allocation5 + $0x148] sm:$0xff] }
  0x24   :  { %602 = vmatpush.bf16.msra.mxu0 %v1124_v21  ;;  %v1180_v60 = vld [vmem:[#allocation5 + $0x1d0] sm:$0xff]  ;;  %v1171_v63 = vld [vmem:[#allocation5 + $0x188] sm:$0xff]  ;;  %v1154_v1 = vld [vmem:[#allocation5 + $0x100] sm:$0xff] }
  0x25   :  { %615 = vmatpush.bf16.msra.mxu1 %v1132_v22  ;;  %v1179_v0 = vld [vmem:[#allocation5 + $0x1c8] sm:$0xff]  ;;  %v1162_v2 = vld [vmem:[#allocation5 + $0x140] sm:$0xff]  ;;  %v201_v5 = vld [vmem:[#allocation1 + $0x24] sm:$0xff] }
  0x26   :  { %628 = vmatpush.bf16.msra.mxu2 %v1140_v23  ;;  %v1170_v3 = vld [vmem:[#allocation5 + $0x180] sm:$0xff]  ;;  %v204_v8 = vld [vmem:[#allocation1 + $0x3f] sm:$0xff]  ;;  %v1193_v9 = vld [vmem:[#allocation7 + $0x38] sm:$0xff] }
  0x27   :  { %641 = vmatpush.bf16.msra.mxu3 %v1148_v24  ;;  %v1178_v4 = vld [vmem:[#allocation5 + $0x1c0] sm:$0xff]  ;;  %v1192_v10 = vld [vmem:[#allocation7 + $0x30] sm:$0xff]  ;;  %v1191_v11 = vld [vmem:[#allocation7 + $0x28] sm:$0xff] }
  0x28   :  { %603 = vmatpush.bf16.msra.mxu0 %v1123_v25  ;;  %v202_v6 = vld [vmem:[#allocation1 + $0x2d] sm:$0xff]  ;;  %v203_v7 = vld [vmem:[#allocation1 + $0x36] sm:$0xff]  ;;  %v1188_v15 = vld [vmem:[#allocation7 + $0x10] sm:$0xff] }
  0x29   :  { %616 = vmatpush.bf16.msra.mxu1 %v1131_v26  ;;  %v1190_v12 = vld [vmem:[#allocation7 + $0x20] sm:$0xff]  ;;  %v1189_v13 = vld [vmem:[#allocation7 + $0x18] sm:$0xff]  ;;  %v1187_v17 = vld [vmem:[#allocation7 + $0x8] sm:$0xff] }
  0x2a   :  { %629 = vmatpush.bf16.msra.mxu2 %v1139_v27  ;;  %v1186_v21 = vld [vmem:[#allocation7] sm:$0xff] }
  0x2b   :  { %642 = vmatpush.bf16.msra.mxu3 %v1147_v28 }
  0x2c   :  { %604 = vmatpush.bf16.msra.mxu0 %v1122_v29 }
  0x2d   :  { %617 = vmatpush.bf16.msra.mxu1 %v1130_v30 }
  0x2e   :  { %630 = vmatpush.bf16.msra.mxu2 %v1138_v31 }
  0x2f   :  { %643 = vmatpush.bf16.msra.mxu3 %v1146_v32  ;;  %605 = vmatmul.bf16.vlgmr.msra.gmra.mxu0 %v197_v39 }
  0x30   :  { %649 = vmatpush.bf16.msrb.mxu0 %v1161_v33  ;;  %618 = vmatmul.bf16.vlgmr.msra.gmra.mxu1 %v198_v42  ;;  %v1201_v42 = vld [vmem:[%s1392_s3] ss:$0 sm:$0xff]  ;;  %s1340_s3 = smov [#allocation9]  }
  0x31   :  { %662 = vmatpush.bf16.msrb.mxu1 %v1169_v34  ;;  %631 = vmatmul.bf16.vlgmr.msra.gmra.mxu2 %v199_v38  ;;  %s816_s14 = sshll.u32 %s1340_s3, 4  ;;  %s817_s14 = int_to_ptr.vmem [resolvable:$true] %s816_s14 }
  0x32   :  { %675 = vmatpush.bf16.msrb.mxu2 %v1177_v35  ;;  %644 = vmatmul.bf16.vlgmr.msra.gmra.mxu3 %v200_v41 }
  0x33   :  { %688 = vmatpush.bf16.msrb.mxu3 %v1185_v36 }
  0x34   :  { %650 = vmatpush.bf16.msrb.mxu0 %v1160_v37 }
  0x35   :  { %663 = vmatpush.bf16.msrb.mxu1 %v1168_v40 }
  0x36   :  { %676 = vmatpush.bf16.msrb.mxu2 %v1176_v43 }
  0x37   :  { %689 = vmatpush.bf16.msrb.mxu3 %v1184_v44 }
  0x38   :  { %651 = vmatpush.bf16.msrb.mxu0 %v1159_v45 }
  0x39   :  { %664 = vmatpush.bf16.msrb.mxu1 %v1167_v46 }
  0x3a   :  { %677 = vmatpush.bf16.msrb.mxu2 %v1175_v47 }
  0x3b   :  { %690 = vmatpush.bf16.msrb.mxu3 %v1183_v48 }
  0x3c   :  { %652 = vmatpush.bf16.msrb.mxu0 %v1158_v49 }
  0x3d   :  { %665 = vmatpush.bf16.msrb.mxu1 %v1166_v50 }
  0x3e   :  { %678 = vmatpush.bf16.msrb.mxu2 %v1174_v51 }
  0x3f   :  { %691 = vmatpush.bf16.msrb.mxu3 %v1182_v52 }
  0x40   :  { %653 = vmatpush.bf16.msrb.mxu0 %v1157_v53 }
  0x41   :  { %666 = vmatpush.bf16.msrb.mxu1 %v1165_v54 }
  0x42   :  { %679 = vmatpush.bf16.msrb.mxu2 %v1173_v55 }
  0x43   :  { %692 = vmatpush.bf16.msrb.mxu3 %v1181_v56 }
  0x44   :  { %654 = vmatpush.bf16.msrb.mxu0 %v1156_v57 }
  0x45   :  { %667 = vmatpush.bf16.msrb.mxu1 %v1164_v58 }
  0x46   :  { %680 = vmatpush.bf16.msrb.mxu2 %v1172_v59 }
  0x47   :  { %693 = vmatpush.bf16.msrb.mxu3 %v1180_v60 }
  0x48   :  { %655 = vmatpush.bf16.msrb.mxu0 %v1155_v61 }
  0x49   :  { %668 = vmatpush.bf16.msrb.mxu1 %v1163_v62 }
  0x4a   :  { %681 = vmatpush.bf16.msrb.mxu2 %v1171_v63 }
  0x4b   :  { %694 = vmatpush.bf16.msrb.mxu3 %v1179_v0 }
  0x4c   :  { %656 = vmatpush.bf16.msrb.mxu0 %v1154_v1 }
  0x4d   :  { %669 = vmatpush.bf16.msrb.mxu1 %v1162_v2 }
  0x4e   :  { %682 = vmatpush.bf16.msrb.mxu2 %v1170_v3 }
  0x4f   :  { %695 = vmatpush.bf16.msrb.mxu3 %v1178_v4  ;;  %657 = vmatmul.bf16.vlgmr.msrb.gmra.mxu0 %v201_v5 }
  0x50   :  { %670 = vmatmul.bf16.vlgmr.msrb.gmra.mxu1 %v202_v6  ;;  %772 = vmatpush.bf16.msra.mxu0 %v1193_v9 }
  0x51   :  { %683 = vmatmul.bf16.vlgmr.msrb.gmra.mxu2 %v203_v7 }
  0x52   :  { %696 = vmatmul.bf16.vlgmr.msrb.gmra.mxu3 %v204_v8 }
  0x54   :  { %773 = vmatpush.bf16.msra.mxu0 %v1192_v10 }
  0x58   :  { %774 = vmatpush.bf16.msra.mxu0 %v1191_v11 }
  0x5c   :  { %775 = vmatpush.bf16.msra.mxu0 %v1190_v12 }
  0x60   :  { %776 = vmatpush.bf16.msra.mxu0 %v1189_v13 }
  0x64   :  { %777 = vmatpush.bf16.msra.mxu0 %v1188_v15 }
  0x68   :  { %778 = vmatpush.bf16.msra.mxu0 %v1187_v17 }
  0x6c   :  { %779 = vmatpush.bf16.msra.mxu0 %v1186_v21 }
  0xac   :  { %v606_v14 = vpop.f32.mrf.mxu0 }
  0xad   :  { %v619_v16 = vpop.f32.mrf.mxu1 }
  0xae   :  { %v620_v25 = vadd.f32 %v619_v16, %v606_v14 }
  0xb4   :  { %v632_v18 = vpop.f32.mrf.mxu2  ;;  %v608_v20 = vpop.f32.mrf.mxu0 }
  0xb5   :  { %v645_v19 = vpop.f32.mrf.mxu3  ;;  %v621_v22 = vpop.f32.mrf.mxu1  ;;  %v633_v26 = vadd.f32 %v632_v18, %v620_v25 }
  0xb7   :  { %v646_v27 = vadd.f32 %v645_v19, %v633_v26 }
  0xbc   :  { %v634_v23 = vpop.f32.mrf.mxu2 }
  0xbd   :  { %v647_v24 = vpop.f32.mrf.mxu3 }
  0xcc   :  { %v658_v28 = vpop.f32.mrf.mxu0 }
  0xcd   :  { %v671_v29 = vpop.f32.mrf.mxu1  ;;  %v659_v30 = vadd.f32 %v658_v28, %v646_v27 }
  0xcf   :  { %v672_v31 = vadd.f32 %v671_v29, %v659_v30 }
  0xd4   :  { %v684_v32 = vpop.f32.mrf.mxu2  ;;  %v660_v35 = vpop.f32.mrf.mxu0 }
  0xd5   :  { %v697_v33 = vpop.f32.mrf.mxu3  ;;  %v685_v34 = vadd.f32 %v684_v32, %v672_v31  ;;  %v673_v36 = vpop.f32.mrf.mxu1 }
  0xd7   :  { %v698_v37 = vadd.f32 %v697_v33, %v685_v34 }
  0xd9   :  { %v701_v38 = vmax.f32 %v698_v37, 0.0 }
  0xdb   :  { %702 = vst [vmem:[#allocation8] sm:$0x3] %v701_v38  ;;  %v703_v39 = vpack.c.bf16 %v701_v38, %v701_v38 }
  0xdc   :  { %v686_v40 = vpop.f32.mrf.mxu2  ;;  %810 = dma.vmem_to_hbm [thread:$0]  %s806_s13, 32, %s808_s11, [#allocation4]  }
  0xdd   :  { %v699_v41 = vpop.f32.mrf.mxu3  ;;  %780 = vmatmul.bf16.vlgmr.msra.gmra.mxu0 %v703_v39 }
 0x15a   :  { %v781_v43 = vpop.f32.mrf.mxu0 }
 0x15b   :  { %v782_v44 = vadd.f32 %v1201_v42, %v781_v43 }
 0x15d   :  { %v786_v45 = vsel %vm785_vm0, %v782_v44, -inf }
 0x15e   :  { %787 = vmax.xlane.f32.xlu0 %v786_v45 }
 0x162   :  { %v783_v46 = vpop.f32.mrf.mxu0 }
 0x1d1   :  { %v788_v47 = vpop.xlane.xlu0 %787 }
 0x1d2   :  { %v789_v48 = vsub.f32 %v782_v44, %v788_v47 }
 0x1d4   :  { %v790_v49 = vmul.f32 1.442695, %v789_v48 }
 0x1d6   :  { %1202 = vpow2.f32 %v790_v49 }
 0x1dc   :  { %v1203_v50 = vpop.eup %1202 }
 0x1dd   :  { %v792_v51 = vsel %vm785_vm0, %v1203_v50, 0.0 }
 0x1de   :  { %793 = vadd.xlane.f32.xlu0 %v792_v51 }
 0x251   :  { %v794_v52 = vpop.xlane.xlu0 %793 }
 0x252   :  { %1204 = vlog2.f32 %v794_v52 }
 0x258   :  { %v1205_v53 = vpop.eup %1204 }
 0x259   :  { %v796_v54 = vmul.f32 0.6931472, %v1205_v53 }
 0x25b   :  { %v797_v55 = vadd.f32 %v796_v54, %v788_v47 }
 0x25d   :  { %v798_v56 = vsub.f32 %v782_v44, %v797_v55 }
 0x25f   :  { %799 = vst [vmem:[#allocation9] sm:$0x3] %v798_v56 }
 0x260   :  { %821 = dma.vmem_to_hbm [thread:$0]  %s817_s14, 32, %s819_s17, [#allocation10]  }
 0x261   :  { %1330 = dma.done.wait [#allocation4], 32  }
 0x262   :  { %1331 = vsyncadd [#allocation4], 4294967264 }
 0x263   :  { %1332 = dma.done.wait [#allocation10], 32  }
 0x264   :  { %1333 = vsyncadd [#allocation10], 4294967264 }
 0x265   :  { %830 = vsyncpa [#allocation3], 1 }
 0x266   :  { %831 = vsyncpa [#allocation6], 1 }
 0x267   :  { %832 = vsyncpa [#allocation4], 1 }
 0x268   :  { %833 = vsyncpa [#allocation10], 1 }

</bundles_post_ra>
